<compile_context>
chip_gen: v6e
topology: v6e:2x2x1
jax: 0.10.0
libtpu: 0.0.40
codegen_flags: <defaults>
</compile_context>

<pallas_src>
from functools import partial

import jax
import jax.numpy as jnp
from jax import lax
from jax.experimental import pallas as pl
from jax.experimental.pallas import tpu as pltpu

SCALED_SILU_FACTOR = 1.0 / 0.6  # ScaledSiLU: silu(x) * (1 / 0.6)


def _round_up(x: int, m: int) -> int:
    return ((x + m - 1) // m) * m


def _head_kernel(x_ref, batch_ref, *rest, n_layers: int, reduction: str,
                 compute_dtype, window: int, n_graphs_pad: int):
    wb_refs = rest[: 2 * n_layers]
    acc_ref = rest[-1]  # (1, 8, n_graphs_pad) f32: row0 = sum/max, row1 = count (mean)

    # ---- accumulator init on the first node tile of this split ----
    @pl.when(pl.program_id(1) == 0)
    def _init():
        if reduction == "max":
            acc_ref[...] = jnp.full(acc_ref.shape, -jnp.inf, dtype=jnp.float32)
        else:
            acc_ref[...] = jnp.zeros(acc_ref.shape, dtype=jnp.float32)

    # ---- MLP hot path (MXU matmuls, f32 accumulation, silu in f32) ----
    # ScaledSiLU's 1/0.6 factor and scale/shift are folded into the weights.
    h = x_ref[...]
    for layer in range(n_layers):
        w = wb_refs[2 * layer][...]
        b = wb_refs[2 * layer + 1][...]                       # (1, out_dim) f32
        h = jnp.dot(h, w, preferred_element_type=jnp.float32) + b
        if layer < n_layers - 1:                              # final projection: no activation
            h = jax.nn.silu(h)
            h = h.astype(compute_dtype)
    # h: (tile, 1) f32 per-node scalar.

    tile = x_ref.shape[0]
    seg = batch_ref[...]                                      # (tile, 1) int32, sorted

    # ---- segment (scatter) reduction over a bounded, 128-aligned graph window ----
    if window < n_graphs_pad:
        first = seg[0:1, 0:1]                                 # min graph id in tile (sorted batch)
        col_start = jnp.minimum((first // 128) * 128,
                                jnp.int32(n_graphs_pad - window))   # (1,1), multiple of 128
        gid = col_start + lax.broadcasted_iota(jnp.int32, (tile, window), 1)
    else:
        col_start = None
        gid = lax.broadcasted_iota(jnp.int32, (tile, window), 1)
    member = seg == gid                                       # (tile, window) bool

    if reduction == "max":
        # window == n_graphs_pad on this path; running max across node tiles.
        masked = jnp.where(member, h, -jnp.inf)
        tile_max = jnp.max(masked, axis=0, keepdims=True)     # (1, n_graphs_pad)
        acc_ref[0, 0:1, :] = jnp.maximum(acc_ref[0, 0:1, :], tile_max)
    else:
        member_f = member.astype(jnp.float32)
        rows = [jnp.sum(h * member_f, axis=0, keepdims=True)]          # per-graph sums
        if reduction == "mean":
            rows.append(jnp.sum(member_f, axis=0, keepdims=True))      # per-graph counts
        if window < n_graphs_pad:
            # Place the window into the full graph axis with a tiny one-hot matmul
            # (static stores only; no dynamic lane offsets needed).
            col = lax.broadcasted_iota(jnp.int32, (window, n_graphs_pad), 1)
            row = lax.broadcasted_iota(jnp.int32, (window, n_graphs_pad), 0)
            place = (col == col_start + row).astype(jnp.float32)       # (window, n_graphs_pad)
            rows = [jnp.dot(r, place, preferred_element_type=jnp.float32) for r in rows]
        for i, r in enumerate(rows):
            acc_ref[0, i:i + 1, :] = acc_ref[0, i:i + 1, :] + r


def _vmem_bytes_estimate(tile, emb, window, n_graphs_pad, layer_shapes,
                         compute_dtype, reduction):
    """Rough VMEM footprint model (double buffers + resident params + big temporaries)."""
    cdt = jnp.dtype(compute_dtype).itemsize

    def padded(r, c, itemsize):
        sub = 8 * (4 // itemsize)                     # 8 sublanes for f32, 16 for bf16
        return _round_up(max(int(r), 1), sub) * _round_up(max(int(c), 1), 128) * itemsize

    total = 2 * padded(tile, emb, cdt)                # node-feature double buffer
    total += 2 * padded(tile, 1, 4)                   # batch-id double buffer (lane padded)
    for d_in, d_out in layer_shapes:                  # weights + biases (double buffered)
        total += 2 * (padded(d_in, d_out, cdt) + padded(1, d_out, 4))
    total += 2 * padded(8, n_graphs_pad, 4)           # resident accumulator block
    total += 3 * padded(tile, emb, 4)                 # MLP f32 temporaries
    ncols = n_graphs_pad if reduction == "max" else window
    total += 4 * padded(tile, ncols, 4)               # gid / member / product temporaries
    if reduction != "max" and window < n_graphs_pad:
        total += 2 * padded(window, n_graphs_pad, 4)  # placement one-hot
    return total


def graph_scalar_output_head(
    node_features,              # [num_nodes, emb_size]
    batch_idx,                  # [num_nodes] int graph index per node (sorted, as in PyG data.batch)
    weights,                    # list of (in_dim, out_dim) matrices
    biases,                     # list of (out_dim,) vectors
    n_graphs: int,              # == data.batch.max() + 1
    *,
    reduction: str = "sum",
    scale=None,
    shift=None,
    tile_n: int | None = None,       # node-tile size; None -> auto (~2 MiB of features/step)
    graph_window: int | None = None, # optional tighter bound on graphs touched per tile
    core_splits: int = 1,            # keep 1 on v5e/v6e; 2 (+core_parallel) for v7x
    core_parallel: bool = False,     # use pltpu.CORE_PARALLEL on the split axis (v7x)
    compute_dtype=jnp.bfloat16,      # matmul-operand / x-stream dtype (f32 accumulation)
    vmem_budget_bytes: int = 48 * 1024 * 1024,
):
    if reduction not in ("sum", "mean", "max"):
        raise ValueError(f"unsupported reduction: {reduction}")
    n_layers = len(weights)
    assert len(biases) == n_layers and n_layers >= 1
    num_nodes, emb = node_features.shape

    # ---- fold ScaledSiLU's 1/0.6 and scale/shift into the weights (done in f32) ----
    #   (silu(x)*c) @ W == silu(x) @ (c*W);  scale*(Wx+b)+shift == (scale*W)x + (scale*b+shift)
    scale_v = 1.0 if scale is None else scale
    shift_v = 0.0 if shift is None else shift
    ws = [jnp.asarray(w, jnp.float32) for w in weights]
    bs = [jnp.asarray(b, jnp.float32).reshape(1, -1) for b in biases]
    for layer in range(1, n_layers):
        ws[layer] = ws[layer] * SCALED_SILU_FACTOR
    ws[-1] = ws[-1] * scale_v
    bs[-1] = bs[-1] * scale_v + shift_v

    csize = jnp.dtype(compute_dtype).itemsize
    n_graphs_pad = _round_up(max(int(n_graphs), 1), 128)
    layer_shapes = [(int(w.shape[0]), int(w.shape[1])) for w in ws]

    # ---- node tile: big (amortize per-grid-step overhead), shrunk to fit the VMEM budget ----
    if tile_n is None:
        tile_n = min(16384, max(2048, _round_up((2 << 20) // max(emb * csize, 1), 1024)))
    tile = _round_up(max(8, min(int(tile_n), _round_up(num_nodes, 8))), 8)

    def _window(t):
        if reduction == "max":
            return n_graphs_pad  # TODO(synk): windowed running-max not implemented
        if graph_window is not None:
            return min(n_graphs_pad, _round_up(max(int(graph_window), 1), 128))
        # sorted, contiguous data.batch => a tile of t nodes spans at most min(t, n_graphs)
        # graph ids; +127 covers the 128-lane alignment of the window start.
        return min(n_graphs_pad, _round_up(min(t, max(int(n_graphs), 1)) + 127, 128))

    while tile > 512 and _vmem_bytes_estimate(
            tile, emb, _window(tile), n_graphs_pad, layer_shapes,
            compute_dtype, reduction) > vmem_budget_bytes:
        tile = max(512, _round_up(tile // 2, 8))
    window = _window(tile)

    n_splits = max(1, min(int(core_splits), pl.cdiv(num_nodes, tile)))
    chunk = n_splits * tile
    num_nodes_pad = _round_up(num_nodes, chunk)
    tiles_per_split = num_nodes_pad // chunk

    x = node_features.astype(compute_dtype)
    batch2d = jnp.asarray(batch_idx, jnp.int32).reshape(num_nodes, 1)
    pad = num_nodes_pad - num_nodes
    if pad:
        x = jnp.pad(x, ((0, pad), (0, 0)))
        # padding nodes get id == n_graphs_pad -> never match any graph column
        batch2d = jnp.pad(batch2d, ((0, pad), (0, 0)), constant_values=n_graphs_pad)

    flat_params, param_specs = [], []
    for w, b in zip(ws, bs):
        wc = w.astype(compute_dtype)
        flat_params += [wc, b]
        # constant index_map -> weights/biases DMA'd once, VMEM-resident across node tiles
        param_specs += [pl.BlockSpec(wc.shape, lambda s, t: (0, 0)),
                        pl.BlockSpec(b.shape, lambda s, t: (0, 0))]

    node_map = lambda s, t: (s * tiles_per_split + t, 0)
    in_specs = [pl.BlockSpec((tile, emb), node_map),
                pl.BlockSpec((tile, 1), node_map)] + param_specs
    # per-split accumulator; only sublane rows 0 (and 1 for mean) are meaningful
    out_spec = pl.BlockSpec((1, 8, n_graphs_pad), lambda s, t: (s, 0, 0))

    split_sem = pltpu.CORE_PARALLEL if core_parallel else "parallel"
    acc = pl.pallas_call(
        partial(_head_kernel, n_layers=n_layers, reduction=reduction,
                compute_dtype=compute_dtype, window=window, n_graphs_pad=n_graphs_pad),
        out_shape=jax.ShapeDtypeStruct((n_splits, 8, n_graphs_pad), jnp.float32),
        grid_spec=pltpu.PrefetchScalarGridSpec(
            num_scalar_prefetch=0,
            grid=(n_splits, tiles_per_split),
            in_specs=in_specs,
            out_specs=out_spec,
        ),
        compiler_params=pltpu.CompilerParams(
            dimension_semantics=(split_sem, "arbitrary"),
            vmem_limit_bytes=int(vmem_budget_bytes),
        ),
    )(x, batch2d, *flat_params)

    # ---- tiny finalize: combine per-split partials, drop graph padding ----
    if reduction == "sum":
        res = acc[:, 0, :].sum(axis=0)
    elif reduction == "mean":
        sums = acc[:, 0, :].sum(axis=0)
        cnts = acc[:, 1, :].sum(axis=0)
        res = sums / jnp.maximum(cnts, 1.0)
    else:  # max
        m = acc[:, 0, :].max(axis=0)
        # TODO(synk): torch_scatter fills empty segments with 0 for reduce='max'; using 0 here too.
        res = jnp.where(jnp.isneginf(m), 0.0, m)
    return res[:n_graphs]


def _reference(x, batch, ws, bs, n_graphs, reduction="sum", scale=None, shift=None):
    h = x.astype(jnp.float32)
    for i, (w, b) in enumerate(zip(ws, bs)):
        h = h @ w.astype(jnp.float32) + b.astype(jnp.float32)
        if i < len(ws) - 1:
            h = jax.nn.silu(h) * SCALED_SILU_FACTOR
    h = h[:, 0]
    if scale is not None:
        h = h * scale
    if shift is not None:
        h = h + shift
    if reduction == "sum":
        return jax.ops.segment_sum(h, batch, num_segments=n_graphs)
    if reduction == "mean":
        s = jax.ops.segment_sum(h, batch, num_segments=n_graphs)
        c = jax.ops.segment_sum(jnp.ones_like(h), batch, num_segments=n_graphs)
        return s / jnp.maximum(c, 1.0)
    if reduction == "max":
        m = jax.ops.segment_max(h, batch, num_segments=n_graphs)
        return jnp.where(jnp.isneginf(m), 0.0, m)
    raise ValueError(reduction)


if __name__ == "__main__":
    # Module-consistent small shapes: emb_size_atom=32, output.num_mlps=5, num_targets=1.
    emb_size, num_mlps, num_targets = 32, 5, 1
    key = jax.random.PRNGKey(0)
    k_xa, k_xb, k_w = jax.random.split(key, 3)

    dims = [emb_size] * num_mlps + [num_targets]
    weights, biases = [], []
    wkeys = jax.random.split(k_w, len(dims) - 1)
    for i, (d_in, d_out) in enumerate(zip(dims[:-1], dims[1:])):
        std = 1.0 / jnp.sqrt(jnp.float32(d_in))
        weights.append(jax.random.normal(wkeys[i], (d_in, d_out), jnp.float32) * std)
        biases.append(jnp.full((d_out,), 0.05 * (i + 1), jnp.float32))

    # Dataset A: 60 atoms over 4 molecules (full-width graph window, node padding).
    num_nodes_a, n_graphs_a = 60, 4
    xa = jax.random.normal(k_xa, (num_nodes_a, emb_size), jnp.float32)
    batch_a = jnp.repeat(jnp.arange(n_graphs_a, dtype=jnp.int32), num_nodes_a // n_graphs_a)

    # Dataset B: 960 atoms over 320 molecules (3 atoms each): exercises the windowed
    # placement path (window=256 < n_graphs_pad=384 at tile_n=64).
    num_nodes_b, n_graphs_b = 960, 320
    xb = jax.random.normal(k_xb, (num_nodes_b, emb_size), jnp.float32)
    batch_b = jnp.repeat(jnp.arange(n_graphs_b, dtype=jnp.int32), num_nodes_b // n_graphs_b)

    # f32 checks: multi-tile grid, core splits, scale/shift folding, all reductions,
    # full-width and windowed segment paths.
    f32_checks = [
        (xa, batch_a, n_graphs_a, dict(reduction="sum", tile_n=16, core_splits=2)),
        (xa, batch_a, n_graphs_a, dict(reduction="sum", scale=2.5, shift=-1.0)),
        (xa, batch_a, n_graphs_a, dict(reduction="mean", tile_n=16)),
        (xa, batch_a, n_graphs_a, dict(reduction="max", tile_n=32, core_splits=2)),
        (xb, batch_b, n_graphs_b, dict(reduction="sum", tile_n=64)),
        (xb, batch_b, n_graphs_b, dict(reduction="mean", tile_n=64)),
    ]
    for x, batch, ng, cfg in f32_checks:
        out = jax.block_until_ready(graph_scalar_output_head(
            x, batch, weights, biases, ng, compute_dtype=jnp.float32, **cfg))
        ref = _reference(x, batch, weights, biases, ng,
                         reduction=cfg["reduction"],
                         scale=cfg.get("scale"), shift=cfg.get("shift"))
        assert out.shape == (ng,)
        assert jnp.allclose(out, ref, atol=1e-3, rtol=1e-3), (cfg, out, ref)

    # Default config (bf16 matmul operands, auto tile): looser tolerance.
    out_bf16 = jax.block_until_ready(graph_scalar_output_head(
        xb, batch_b, weights, biases, n_graphs_b, reduction="sum"))
    ref = _reference(xb, batch_b, weights, biases, n_graphs_b, "sum")
    assert jnp.allclose(out_bf16, ref, atol=1e-1, rtol=1e-1), (out_bf16, ref)

    print("KERNEL_OK")
</pallas_src>

<mosaic_0001>
module attributes {stable_mosaic.version = 11 : i64} {
  func.func @_head_kernel(%arg0: i32, %arg1: i32, %arg2: memref<16x32xf32, #tpu.memory_space<vmem>>, %arg3: memref<16x1xi32, #tpu.memory_space<vmem>>, %arg4: memref<32x32xf32, #tpu.memory_space<vmem>>, %arg5: memref<1x32xf32, #tpu.memory_space<vmem>>, %arg6: memref<32x32xf32, #tpu.memory_space<vmem>>, %arg7: memref<1x32xf32, #tpu.memory_space<vmem>>, %arg8: memref<32x32xf32, #tpu.memory_space<vmem>>, %arg9: memref<1x32xf32, #tpu.memory_space<vmem>>, %arg10: memref<32x32xf32, #tpu.memory_space<vmem>>, %arg11: memref<1x32xf32, #tpu.memory_space<vmem>>, %arg12: memref<32x1xf32, #tpu.memory_space<vmem>>, %arg13: memref<1x1xf32, #tpu.memory_space<vmem>>, %arg14: memref<1x8x128xf32, #tpu.memory_space<vmem>>) attributes {dimension_semantics = [#tpu.dimension_semantics<parallel>, #tpu.dimension_semantics<arbitrary>], iteration_bounds = array<i64: 2, 2>, scalar_prefetch = 0 : i64, scratch_operands = 0 : i64, tpu.core_type = #tpu.core_type<tc>, window_params = [{transform_indices = @transform_0, window_bounds = array<i64: 16, 32>}, {transform_indices = @transform_1, window_bounds = array<i64: 16, 1>}, {pipeline_mode = #tpu.pipeline_mode<synchronous>, transform_indices = @transform_2, window_bounds = array<i64: 32, 32>}, {pipeline_mode = #tpu.pipeline_mode<synchronous>, transform_indices = @transform_3, window_bounds = array<i64: 1, 32>}, {pipeline_mode = #tpu.pipeline_mode<synchronous>, transform_indices = @transform_4, window_bounds = array<i64: 32, 32>}, {pipeline_mode = #tpu.pipeline_mode<synchronous>, transform_indices = @transform_5, window_bounds = array<i64: 1, 32>}, {pipeline_mode = #tpu.pipeline_mode<synchronous>, transform_indices = @transform_6, window_bounds = array<i64: 32, 32>}, {pipeline_mode = #tpu.pipeline_mode<synchronous>, transform_indices = @transform_7, window_bounds = array<i64: 1, 32>}, {pipeline_mode = #tpu.pipeline_mode<synchronous>, transform_indices = @transform_8, window_bounds = array<i64: 32, 32>}, {pipeline_mode = #tpu.pipeline_mode<synchronous>, transform_indices = @transform_9, window_bounds = array<i64: 1, 32>}, {pipeline_mode = #tpu.pipeline_mode<synchronous>, transform_indices = @transform_10, window_bounds = array<i64: 32, 1>}, {pipeline_mode = #tpu.pipeline_mode<synchronous>, transform_indices = @transform_11, window_bounds = array<i64: 1, 1>}, {transform_indices = @transform_12, window_bounds = array<i64: 1, 8, 128>}]} {
    %c0_i32 = arith.constant 0 : i32
    %0 = arith.cmpi eq, %arg1, %c0_i32 : i32
    %1 = arith.extui %0 : i1 to i32
    %c0_i32_0 = arith.constant 0 : i32
    %2 = arith.cmpi ne, %1, %c0_i32_0 : i32
    scf.if %2 {
      %cst_39 = arith.constant 0.000000e+00 : f32
      %69 = vector.broadcast %cst_39 : f32 to vector<1x8x128xf32>
      %c0_40 = arith.constant 0 : index
      %c0_41 = arith.constant 0 : index
      %c0_42 = arith.constant 0 : index
      %70 = vector.load %arg14[%c0_40, %c0_41, %c0_42] : memref<1x8x128xf32, #tpu.memory_space<vmem>>, vector<1x8x128xf32>
      tpu.vector_store %arg14[%c0_40, %c0_41, %c0_42], %69 {strides = array<i32>} : memref<1x8x128xf32, #tpu.memory_space<vmem>>, vector<1x8x128xf32>,
    } else {
    }
    %c0 = arith.constant 0 : index
    %c0_1 = arith.constant 0 : index
    %3 = vector.load %arg2[%c0, %c0_1] : memref<16x32xf32, #tpu.memory_space<vmem>>, vector<16x32xf32>
    %c0_2 = arith.constant 0 : index
    %c0_3 = arith.constant 0 : index
    %4 = vector.load %arg4[%c0_2, %c0_3] : memref<32x32xf32, #tpu.memory_space<vmem>>, vector<32x32xf32>
    %c0_4 = arith.constant 0 : index
    %c0_5 = arith.constant 0 : index
    %5 = vector.load %arg5[%c0_4, %c0_5] : memref<1x32xf32, #tpu.memory_space<vmem>>, vector<1x32xf32>
    %cst = arith.constant dense<0.000000e+00> : vector<16x32xf32>
    %6 = tpu.matmul %3, %4, %cst {dimension_numbers = #tpu.dot_dimension_numbers<[1], [0], [0], [1], [0, 0, 1, 1], [], []>} : vector<16x32xf32>, vector<32x32xf32>, vector<16x32xf32> -> vector<16x32xf32>
    %7 = vector.broadcast %5 : vector<1x32xf32> to vector<16x32xf32>
    %8 = arith.addf %6, %7 : vector<16x32xf32>
    %9 = arith.negf %8 : vector<16x32xf32>
    %10 = math.exp %9 : vector<16x32xf32>
    %cst_6 = arith.constant 1.000000e+00 : f32
    %11 = vector.broadcast %cst_6 : f32 to vector<16x32xf32>
    %12 = arith.addf %11, %10 : vector<16x32xf32>
    %13 = arith.divf %11, %12 : vector<16x32xf32>
    %14 = arith.mulf %8, %13 : vector<16x32xf32>
    %c0_7 = arith.constant 0 : index
    %c0_8 = arith.constant 0 : index
    %15 = vector.load %arg6[%c0_7, %c0_8] : memref<32x32xf32, #tpu.memory_space<vmem>>, vector<32x32xf32>
    %c0_9 = arith.constant 0 : index
    %c0_10 = arith.constant 0 : index
    %16 = vector.load %arg7[%c0_9, %c0_10] : memref<1x32xf32, #tpu.memory_space<vmem>>, vector<1x32xf32>
    %cst_11 = arith.constant dense<0.000000e+00> : vector<16x32xf32>
    %17 = tpu.matmul %14, %15, %cst_11 {dimension_numbers = #tpu.dot_dimension_numbers<[1], [0], [0], [1], [0, 0, 1, 1], [], []>} : vector<16x32xf32>, vector<32x32xf32>, vector<16x32xf32> -> vector<16x32xf32>
    %18 = vector.broadcast %16 : vector<1x32xf32> to vector<16x32xf32>
    %19 = arith.addf %17, %18 : vector<16x32xf32>
    %20 = arith.negf %19 : vector<16x32xf32>
    %21 = math.exp %20 : vector<16x32xf32>
    %cst_12 = arith.constant 1.000000e+00 : f32
    %22 = vector.broadcast %cst_12 : f32 to vector<16x32xf32>
    %23 = arith.addf %22, %21 : vector<16x32xf32>
    %24 = arith.divf %22, %23 : vector<16x32xf32>
    %25 = arith.mulf %19, %24 : vector<16x32xf32>
    %c0_13 = arith.constant 0 : index
    %c0_14 = arith.constant 0 : index
    %26 = vector.load %arg8[%c0_13, %c0_14] : memref<32x32xf32, #tpu.memory_space<vmem>>, vector<32x32xf32>
    %c0_15 = arith.constant 0 : index
    %c0_16 = arith.constant 0 : index
    %27 = vector.load %arg9[%c0_15, %c0_16] : memref<1x32xf32, #tpu.memory_space<vmem>>, vector<1x32xf32>
    %cst_17 = arith.constant dense<0.000000e+00> : vector<16x32xf32>
    %28 = tpu.matmul %25, %26, %cst_17 {dimension_numbers = #tpu.dot_dimension_numbers<[1], [0], [0], [1], [0, 0, 1, 1], [], []>} : vector<16x32xf32>, vector<32x32xf32>, vector<16x32xf32> -> vector<16x32xf32>
    %29 = vector.broadcast %27 : vector<1x32xf32> to vector<16x32xf32>
    %30 = arith.addf %28, %29 : vector<16x32xf32>
    %31 = arith.negf %30 : vector<16x32xf32>
    %32 = math.exp %31 : vector<16x32xf32>
    %cst_18 = arith.constant 1.000000e+00 : f32
    %33 = vector.broadcast %cst_18 : f32 to vector<16x32xf32>
    %34 = arith.addf %33, %32 : vector<16x32xf32>
    %35 = arith.divf %33, %34 : vector<16x32xf32>
    %36 = arith.mulf %30, %35 : vector<16x32xf32>
    %c0_19 = arith.constant 0 : index
    %c0_20 = arith.constant 0 : index
    %37 = vector.load %arg10[%c0_19, %c0_20] : memref<32x32xf32, #tpu.memory_space<vmem>>, vector<32x32xf32>
    %c0_21 = arith.constant 0 : index
    %c0_22 = arith.constant 0 : index
    %38 = vector.load %arg11[%c0_21, %c0_22] : memref<1x32xf32, #tpu.memory_space<vmem>>, vector<1x32xf32>
    %cst_23 = arith.constant dense<0.000000e+00> : vector<16x32xf32>
    %39 = tpu.matmul %36, %37, %cst_23 {dimension_numbers = #tpu.dot_dimension_numbers<[1], [0], [0], [1], [0, 0, 1, 1], [], []>} : vector<16x32xf32>, vector<32x32xf32>, vector<16x32xf32> -> vector<16x32xf32>
    %40 = vector.broadcast %38 : vector<1x32xf32> to vector<16x32xf32>
    %41 = arith.addf %39, %40 : vector<16x32xf32>
    %42 = arith.negf %41 : vector<16x32xf32>
    %43 = math.exp %42 : vector<16x32xf32>
    %cst_24 = arith.constant 1.000000e+00 : f32
    %44 = vector.broadcast %cst_24 : f32 to vector<16x32xf32>
    %45 = arith.addf %44, %43 : vector<16x32xf32>
    %46 = arith.divf %44, %45 : vector<16x32xf32>
    %47 = arith.mulf %41, %46 : vector<16x32xf32>
    %c0_25 = arith.constant 0 : index
    %c0_26 = arith.constant 0 : index
    %48 = vector.load %arg12[%c0_25, %c0_26] : memref<32x1xf32, #tpu.memory_space<vmem>>, vector<32x1xf32>
    %c0_27 = arith.constant 0 : index
    %c0_28 = arith.constant 0 : index
    %49 = vector.load %arg13[%c0_27, %c0_28] : memref<1x1xf32, #tpu.memory_space<vmem>>, vector<1x1xf32>
    %cst_29 = arith.constant dense<0.000000e+00> : vector<16x1xf32>
    %50 = tpu.matmul %47, %48, %cst_29 {dimension_numbers = #tpu.dot_dimension_numbers<[1], [0], [0], [1], [0, 0, 1, 1], [], []>} : vector<16x32xf32>, vector<32x1xf32>, vector<16x1xf32> -> vector<16x1xf32>
    %51 = vector.broadcast %49 : vector<1x1xf32> to vector<16x1xf32>
    %52 = arith.addf %50, %51 : vector<16x1xf32>
    %c0_30 = arith.constant 0 : index
    %c0_31 = arith.constant 0 : index
    %53 = vector.load %arg3[%c0_30, %c0_31] : memref<16x1xi32, #tpu.memory_space<vmem>>, vector<16x1xi32>
    %54 = tpu.iota {dimensions = array<i32: 1>} : vector<16x128xi32>
    %55 = vector.broadcast %53 : vector<16x1xi32> to vector<16x128xi32>
    %56 = arith.cmpi eq, %55, %54 : vector<16x128xi32>
    %57 = arith.extui %56 : vector<16x128xi1> to vector<16x128xi32>
    %58 = arith.sitofp %57 : vector<16x128xi32> to vector<16x128xf32>
    %59 = vector.broadcast %52 : vector<16x1xf32> to vector<16x128xf32>
    %60 = arith.mulf %59, %58 : vector<16x128xf32>
    %cst_32 = arith.constant dense<0.000000e+00> : vector<128xf32>
    %61 = vector.multi_reduction <add>, %60, %cst_32 [0] : vector<16x128xf32> to vector<128xf32>
    %62 = vector.shape_cast %61 : vector<128xf32> to vector<1x128xf32>
    %c0_33 = arith.constant 0 : index
    %c0_34 = arith.constant 0 : index
    %c0_35 = arith.constant 0 : index
    %63 = vector.load %arg14[%c0_33, %c0_34, %c0_35] : memref<1x8x128xf32, #tpu.memory_space<vmem>>, vector<1x1x128xf32>
    %64 = vector.shape_cast %63 : vector<1x1x128xf32> to vector<1x128xf32>
    %65 = arith.addf %64, %62 : vector<1x128xf32>
    %c0_36 = arith.constant 0 : index
    %c0_37 = arith.constant 0 : index
    %c0_38 = arith.constant 0 : index
    %66 = vector.load %arg14[%c0_36, %c0_37, %c0_38] : memref<1x8x128xf32, #tpu.memory_space<vmem>>, vector<1x1x128xf32>
    %67 = vector.shape_cast %66 : vector<1x1x128xf32> to vector<1x128xf32>
    %68 = vector.shape_cast %65 : vector<1x128xf32> to vector<1x1x128xf32>
    tpu.vector_store %arg14[%c0_36, %c0_37, %c0_38], %68 {strides = array<i32>} : memref<1x8x128xf32, #tpu.memory_space<vmem>>, vector<1x1x128xf32>,
    return
  }
  func.func @transform_0(%arg0: i32, %arg1: i32) -> (i32, i32) {
    %c2_i32 = arith.constant 2 : i32
    %0 = arith.muli %arg0, %c2_i32 : i32
    %1 = arith.addi %0, %arg1 : i32
    %c0_i32 = arith.constant 0 : i32
    %c0_i32_0 = arith.constant 0 : i32
    return %1, %c0_i32 : i32, i32
  }
  func.func @transform_1(%arg0: i32, %arg1: i32) -> (i32, i32) {
    %c2_i32 = arith.constant 2 : i32
    %0 = arith.muli %arg0, %c2_i32 : i32
    %1 = arith.addi %0, %arg1 : i32
    %c0_i32 = arith.constant 0 : i32
    %c0_i32_0 = arith.constant 0 : i32
    return %1, %c0_i32 : i32, i32
  }
  func.func @transform_2(%arg0: i32, %arg1: i32) -> (i32, i32) {
    %c0_i32 = arith.constant 0 : i32
    %c0_i32_0 = arith.constant 0 : i32
    %c0_i32_1 = arith.constant 0 : i32
    return %c0_i32, %c0_i32_0 : i32, i32
  }
  func.func @transform_3(%arg0: i32, %arg1: i32) -> (i32, i32) {
    %c0_i32 = arith.constant 0 : i32
    %c0_i32_0 = arith.constant 0 : i32
    %c0_i32_1 = arith.constant 0 : i32
    return %c0_i32, %c0_i32_0 : i32, i32
  }
  func.func @transform_4(%arg0: i32, %arg1: i32) -> (i32, i32) {
    %c0_i32 = arith.constant 0 : i32
    %c0_i32_0 = arith.constant 0 : i32
    %c0_i32_1 = arith.constant 0 : i32
    return %c0_i32, %c0_i32_0 : i32, i32
  }
  func.func @transform_5(%arg0: i32, %arg1: i32) -> (i32, i32) {
    %c0_i32 = arith.constant 0 : i32
    %c0_i32_0 = arith.constant 0 : i32
    %c0_i32_1 = arith.constant 0 : i32
    return %c0_i32, %c0_i32_0 : i32, i32
  }
  func.func @transform_6(%arg0: i32, %arg1: i32) -> (i32, i32) {
    %c0_i32 = arith.constant 0 : i32
    %c0_i32_0 = arith.constant 0 : i32
    %c0_i32_1 = arith.constant 0 : i32
    return %c0_i32, %c0_i32_0 : i32, i32
  }
  func.func @transform_7(%arg0: i32, %arg1: i32) -> (i32, i32) {
    %c0_i32 = arith.constant 0 : i32
    %c0_i32_0 = arith.constant 0 : i32
    %c0_i32_1 = arith.constant 0 : i32
    return %c0_i32, %c0_i32_0 : i32, i32
  }
  func.func @transform_8(%arg0: i32, %arg1: i32) -> (i32, i32) {
    %c0_i32 = arith.constant 0 : i32
    %c0_i32_0 = arith.constant 0 : i32
    %c0_i32_1 = arith.constant 0 : i32
    return %c0_i32, %c0_i32_0 : i32, i32
  }
  func.func @transform_9(%arg0: i32, %arg1: i32) -> (i32, i32) {
    %c0_i32 = arith.constant 0 : i32
    %c0_i32_0 = arith.constant 0 : i32
    %c0_i32_1 = arith.constant 0 : i32
    return %c0_i32, %c0_i32_0 : i32, i32
  }
  func.func @transform_10(%arg0: i32, %arg1: i32) -> (i32, i32) {
    %c0_i32 = arith.constant 0 : i32
    %c0_i32_0 = arith.constant 0 : i32
    %c0_i32_1 = arith.constant 0 : i32
    return %c0_i32, %c0_i32_0 : i32, i32
  }
  func.func @transform_11(%arg0: i32, %arg1: i32) -> (i32, i32) {
    %c0_i32 = arith.constant 0 : i32
    %c0_i32_0 = arith.constant 0 : i32
    %c0_i32_1 = arith.constant 0 : i32
    return %c0_i32, %c0_i32_0 : i32, i32
  }
  func.func @transform_12(%arg0: i32, %arg1: i32) -> (i32, i32, i32) {
    %c0_i32 = arith.constant 0 : i32
    %c0_i32_0 = arith.constant 0 : i32
    %c0_i32_1 = arith.constant 0 : i32
    return %arg0, %c0_i32, %c0_i32_0 : i32, i32, i32
  }
}

</mosaic_0001>

<bundles_post_ra>
// kernel: tpu_custom_call.1
= control target key start
LH: loop header
LB: loop body
LE: loop exit
PB: predicated region body
PF: predicated region fallthrough
CT: control target
= control target key end

     0   :  { %s1760_s0 = inlined_call_operand.vmem [shape: f32[64,32], index: 0, kind: input, shape index: {}]   ;;  %s1761_s1 = inlined_call_operand.vmem [shape: s32[64,1], index: 1, kind: input, shape index: {}]   ;;  %s1762_s2 = inlined_call_operand.vmem [shape: f32[32,32], index: 2, kind: input, shape index: {}]   ;;  %s1763_s3 = inlined_call_operand.vmem [shape: f32[1,32], index: 3, kind: input, shape index: {}]   ;;  %s1764_s4 = inlined_call_operand.vmem [shape: f32[32,32], index: 4, kind: input, shape index: {}]   ;;  %s1765_s5 = inlined_call_operand.vmem [shape: f32[1,32], index: 5, kind: input, shape index: {}]   ;;  %s1766_s6 = inlined_call_operand.vmem [shape: f32[32,32], index: 6, kind: input, shape index: {}]   ;;  %s1767_s7 = inlined_call_operand.vmem [shape: f32[1,32], index: 7, kind: input, shape index: {}]   ;;  %s1768_s8 = inlined_call_operand.vmem [shape: f32[32,32], index: 8, kind: input, shape index: {}]   ;;  %s1769_s9 = inlined_call_operand.vmem [shape: f32[1,32], index: 9, kind: input, shape index: {}]   ;;  %s1770_s10 = inlined_call_operand.vmem [shape: f32[32,1], index: 10, kind: input, shape index: {}]   ;;  %s1771_s11 = inlined_call_operand.<no memory space> [shape: f32[1,1], index: 11, kind: input, shape index: {}]   ;;  %s1772_s12 = inlined_call_operand.hbm [shape: f32[2,8,128], index: 12, kind: output, shape index: {}]  }
   0x1   :  { %v17_v0 = vstv %s1771_s11 }
   0x2   :  { %18 = vst [vmem:[#allocation2] sm:$0x1] %v17_v0 }
   0x3   :  { %19 = vsyncpa [#allocation4], 0 }
   0x4   :  { %21 = vsyncpa [#allocation4 + $0x1], 0  ;;  %s1541_s23 = smov 0   ;;  %s1543_s24 = smov 0  }
   0x5   :  { %s1545_s25 = smov 0   ;;  %s1547_s26 = smov 0  }
   0x6   :  { %s1549_s27 = smov 0   ;;  %s1551_s28 = smov 0  }
   0x7   :  { %s1553_s29 = smov 0   ;;  %s1555_s30 = smov 0  }
   0x8 LB: > { %1778 = sst [smem:[#allocation6_spill]] %s1447_s25  ;;  %s1136_s11 = sadd.s32 4294967295, %s1467_s30   ;;  %s1467_s30 = sphi %s1555_s30, %s27_s30   ;;  %s1463_s29 = sphi %s1553_s29, %s1793_s29   ;;  %s1459_s28 = sphi %s1551_s28, %s1792_s28   ;;  %s1455_s27 = sphi %s1549_s27, %s1791_s27   ;;  %s1451_s26 = sphi %s1547_s26, %s1790_s26   ;;  %s1447_s25 = sphi %s1545_s25, %s1789_s25   ;;  %s1443_s24 = sphi %s1543_s24, %s1795_s24   ;;  %s1439_s23 = sphi %s1541_s23, %s1794_s23  }
   0x9   : > { %1779 = sst [smem:[#allocation7_spill]] %s1459_s28  ;;  %s1137_s13 = sadd.s32 4294967294, %s1467_s30  }
   0xa   : > { %1780 = sst [smem:[#allocation8_spill]] %s1463_s29  ;;  %s36_s14 = sadd.s32 1, %s1459_s28 }
   0xb   : > { %p37_p0 = scmp.ge.s32.totalorder %s36_s14, 2  ;;  %s39_s15 = sadd.s32 1, %s1463_s29 }
   0xc   : > { %p326_p1 = scmp.ne.s32.totalorder %s1447_s25, %s1443_s24  ;;  %p327_p2 = scmp.eq.s32.totalorder %s1136_s11, 3 }
   0xd   : > { %s1797_s14 = smov (%p37_p0, %s36_s14), 0  ;;  %s1799_s15 = smov (!%p37_p0, %s39_s15), %s1463_s29 }
   0xe   : > { %1781 = sst [smem:[#allocation9_spill]] %s1797_s14  ;;  %p1590_p3 = por %p327_p2, %p326_p1 }
   0xf   : > { %p332_p4 = scmp.ne.s32.totalorder %s1443_s24, %s1439_s23  ;;  %p41_p5 = scmp.ge.s32.totalorder %s1799_s15, 2 }
  0x10   : > { %p333_p6 = scmp.eq.s32.totalorder %s1137_s13, 3  ;;  %p1144_p7 = scmp.ge.s32.totalorder %s1467_s30, 1 }
  0x11   : > { %p407_p8 = scmp.lt.s32.totalorder %s1467_s30, 5  ;;  %s1801_s15 = smov (%p41_p5, %s1799_s15), 0 }
  0x12   : > { %1783 = sst [smem:[#allocation10_spill]] %s1801_s15  ;;  %p1600_p9 = por %p333_p6, %p332_p4 }
  0x13   : > { %p408_p10 = pnand %p1144_p7, %p407_p8  ;;  %s313_s18 = ssub.s32 %s1463_s29, %s1801_s15 }
  0x14   : > { %s1784_s17 = scalar_select %p1600_p9, 1, 0 }
  0x15   : > { %s316_s19 = sadd.s32 1, %s1447_s25  ;;  %p314_p11 = scmp.eq.s32.totalorder %s313_s18, 0 }
  0x16   : > { %1785 = sst [smem:[#allocation11_spill]] %s1784_s17  ;;  %411 = sbr.rel (%p408_p10) target bundleno = 1329 (0x531), region = 68 }
  0x17   : > { %s1608_s20 = scalar_select %p314_p11, %s1447_s25, %s316_s19  }
  0x18   : > { %s455_s21 = sand.u32 (!%p408_p10), 1, %s1443_s24   ;;  %s1146_s22 = sshll.u32 (!%p408_p10), %s1455_s27, 1 }
  0x19   : > { %1786 = sst [smem:[#allocation12_spill]] %s1608_s20  ;;  %s1145_s11 = sshll.u32 (!%p408_p10), %s455_s21, 3 }
  0x1a   : > { %s459_s13 = sadd.s32 (!%p408_p10), %s1451_s26, %s1146_s22  ;;  %s1623_s25 = scalar_lea.vmem (!%p408_p10), [#allocation3], %s1145_s11 }
  0x1b   : > { %s1147_s14 = sshll.u32 %s459_s13, 1  ;;  %p1152_p13 = scmp.ne.s32.totalorder %s1451_s26, 0 }
  0x1c   : > { %p461_p12 = scmp.lt.s32.totalorder %s1147_s14, 7 }
  0x1d   : > { %481 = sbr.rel (%p1152_p13) target bundleno = 36 (0x24), region = 72 }
  0x1e   : > { %s1803_s14 = smov (!%p461_p12, %s1147_s14), 7 }
  0x1f   : > { %s1148_s28 = sshll.u32 %s1803_s14, 3 }
  0x20   : > { %s464_s18 = scalar_lea.vmem %s1760_s0, %s1148_s28  ;;  %s1621_s20 = scalar_lea.vmem %s1761_s1, %s1148_s28 }
  0x22   : > { %v1469_v1 = vmov 0.0  }
  0x23   : > { %482 = vst [vmem:[%s1623_s25] sm:$0xff] %v1469_v1 }
  0x24 PF: > { %v488_v2 = vld [vmem:[%s1762_s2 + $0x18] sm:$0xff]  ;;  %v487_v3 = vld [vmem:[%s1762_s2 + $0x10] sm:$0xff]  ;;  %vm496_vm0 = vcmask 261120   ;;  %v483_v4 = vld [vmem:[%s464_s18] sm:$0xff]  ;;  %s1054_s28 = sshll.u32 %s1623_s25, 4  ;;  %s1041_s13 = scalar_lea.sflag [#allocation4], %s455_s21  ;;  %s1055_s28 = int_to_ptr.vmem [resolvable:$true] %s1054_s28 }
  0x25   : > { %1212 = vmatprep.subr.mxu0 %v488_v2  ;;  %v486_v5 = vld [vmem:[%s1762_s2 + $0x8] sm:$0xff]  ;;  %1220 = vmatprep.mubr.msk.f32.mxu0 %vm496_vm0, %v483_v4  ;;  %v485_v6 = vld [vmem:[%s1762_s2] sm:$0xff]  ;;  %v595_v8 = vld [vmem:[%s1764_s4 + $0x18] sm:$0xff]  ;;  %s1375_s19 = scalar_lea.vmem %s1055_s28, 128  ;;  %s1472_s22 = smov [#allocation3]  }
  0x26   : > { %1213 = vmatpush3.msra.mxu0 %v488_v2  ;;  %v484_v7 = vld [vmem:[%s464_s18 + $0x8] sm:$0xff]  ;;  %1223 = vmatprep.subr.mxu1 %v595_v8  ;;  %v594_v9 = vld [vmem:[%s1764_s4 + $0x10] sm:$0xff]  ;;  %v592_v11 = vld [vmem:[%s1764_s4] sm:$0xff]  ;;  %p1376_p0 = scmp.ne.s32.totalorder %s1055_s28, %s1375_s19  ;;  %s1379_s14 = sshll.u32 %s1472_s22, 4  ;;  %s1380_s14 = int_to_ptr.vmem [resolvable:$false] %s1379_s14 }
  0x27   : > { %1214 = vmatprep.subr.mxu0 %v487_v3  ;;  %1224 = vmatpush3.msra.mxu1 %v595_v8  ;;  %v593_v10 = vld [vmem:[%s1764_s4 + $0x8] sm:$0xff]  ;;  %v1153_v12 = vld [vmem:[%s1763_s3] ss:$0 sm:$0xff]  ;;  %v701_v27 = vld [vmem:[%s1766_s6 + $0x18] sm:$0xff]  ;;  %p1382_p4 = scmp.lt.s32.totalorder %s1055_s28, %s1380_s14 }
  0x28   : > { %1215 = vmatpush3.msra.mxu0 %v487_v3  ;;  %1225 = vmatprep.subr.mxu1 %v594_v9  ;;  %v700_v28 = vld [vmem:[%s1766_s6 + $0x10] sm:$0xff]  ;;  %v699_v29 = vld [vmem:[%s1766_s6 + $0x8] sm:$0xff]  ;;  %v698_v30 = vld [vmem:[%s1766_s6] sm:$0xff]  ;;  %p1377_p1 = pnand %p1376_p0, %p1590_p3 }
  0x29   : > { %1216 = vmatprep.subr.mxu0 %v486_v5  ;;  %1226 = vmatpush3.msra.mxu1 %v594_v9  ;;  %v1158_v31 = vld [vmem:[%s1765_s5] ss:$0 sm:$0xff]  ;;  %v807_v46 = vld [vmem:[%s1768_s8 + $0x18] sm:$0xff]  ;;  %v806_v47 = vld [vmem:[%s1768_s8 + $0x10] sm:$0xff] }
  0x2a   : > { %1217 = vmatpush3.msra.mxu0 %v486_v5  ;;  %1227 = vmatprep.subr.mxu1 %v593_v10  ;;  %v805_v48 = vld [vmem:[%s1768_s8 + $0x8] sm:$0xff]  ;;  %v804_v49 = vld [vmem:[%s1768_s8] sm:$0xff]  ;;  %v913_v1 = vld [vmem:[%s1770_s10 + $0x18] sm:$0xff]  ;;  %p1378_p2 = pneg %p1377_p1 }
  0x2b   : > { %1218 = vmatprep.subr.mxu0 %v485_v6  ;;  %1228 = vmatpush3.msra.mxu1 %v593_v10  ;;  %v1163_v50 = vld [vmem:[%s1767_s7] ss:$0 sm:$0xff]  ;;  %v912_v2 = vld [vmem:[%s1770_s10 + $0x10] sm:$0xff]  ;;  %v911_v3 = vld [vmem:[%s1770_s10 + $0x8] sm:$0xff] }
  0x2c   : > { %1219 = vmatpush3.msra.mxu0 %v485_v6  ;;  %1229 = vmatprep.subr.mxu1 %v592_v11  ;;  %v910_v4 = vld [vmem:[%s1770_s10] sm:$0xff]  ;;  %v1470_v6 = vmov 0  }
  0x2d   : > { %1221 = vmatmul.mubr.msk.f32.vlgmr.msra.gmra.mxu0 %vm496_vm0, %v484_v7  ;;  %1230 = vmatpush3.msra.mxu1 %v592_v11  ;;  %v1002_v5 = vld [vmem:[%s1621_s20] sm:$0xff] }
  0x2e   : > { %1234 = vmatprep.subr.mxu0 %v701_v27  ;;  %1245 = vmatprep.subr.mxu1 %v807_v46  ;;  %v1168_v7 = vld [vmem:[%s1769_s9] ss:$0 sm:$0xff] }
  0x2f   : > { %1235 = vmatpush3.msra.mxu0 %v701_v27  ;;  %1341 = vset.pattern.permute.xlu0 %v1470_v6 }
  0x30   : > { %1236 = vmatprep.subr.mxu0 %v700_v28  ;;  %1342 = vset.pattern.permute.xlu1 %v1470_v6 }
  0x31   : > { %1237 = vmatpush3.msra.mxu0 %v700_v28  ;;  %1007 = vperm.xlu0 %1341, %v1002_v5   ;;  %v1004_v28 = vlaneseq }
  0x32   : > { %1238 = vmatprep.subr.mxu0 %v699_v29 }
  0x33   : > { %1239 = vmatpush3.msra.mxu0 %v699_v29 }
  0x34   : > { %1240 = vmatprep.subr.mxu0 %v698_v30 }
  0x35   : > { %1241 = vmatpush3.msra.mxu0 %v698_v30  ;;  %v1005_v30 = vand.u32 127, %v1004_v28 }
  0x36   : > { %1256 = vmatprep.subr.mxu0 %v913_v1 }
  0xac   : > { %v1008_v29 = vpop.permute.xlu0 %1007 }
  0xad   : > { %vm1012_vm1 = vcmp.eq.s32.totalorder %v1008_v29, %v1005_v30 }
  0xed   : > { %v1222_v13 = vpop.f32.mrf.mxu0 }
  0xee   : > { %v575_v14 = vadd.f32 %v1222_v13, %v1153_v12 }
  0xef   : > { %v569_v15 = vpop.f32.mrf.mxu0 }
  0xf0   : > { %v1157_v16 = vmul.f32 -1.442695, %v575_v14  ;;  %v570_v17 = vadd.f32 %v1153_v12, %v569_v15 }
  0xf2   : > { %1343 = vpow2.f32 %v1157_v16  ;;  %v1156_v18 = vmul.f32 -1.442695, %v570_v17 }
  0xf4   : > { %1345 = vpow2.f32 %v1156_v18 }
  0xff   : > { %v1344_v19 = vpop.eup %1343 }
 0x100   : > { %v585_v20 = vadd.f32 1.0, %v1344_v19 }
 0x101   : > { %v1346_v21 = vpop.eup %1345 }
 0x102   : > { %v584_v22 = vadd.f32 1.0, %v1346_v21  ;;  %1347 = vrcp.f32 %v585_v20 }
 0x104   : > { %1349 = vrcp.f32 %v584_v22  ;;  %v1003_v22 = vld [vmem:[%s1621_s20 + $0x8] sm:$0xff]  ;;  %s1179_s20 = sshll.u32 %s1455_s27, 7  ;;  %s1381_s27 = scalar_lea.vmem %s1380_s14, 256 }
 0x105   : > { %1010 = vperm.xlu0 %1341, %v1003_v22   ;;  %s1052_s11 = scalar_lea.hbm %s1772_s12, %s1179_s20  ;;  %p1383_p5 = scmp.lt.s32.totalorder %s1381_s27, %s1375_s19 }
 0x107   : > { %p1384_p6 = por %p1383_p5, %p1382_p4 }
 0x109   : > { %p1385_p7 = pnand %p1384_p6, %p1378_p2 }
 0x10f   : > { %v1348_v23 = vpop.eup %1347 }
 0x110   : > { %v591_v26 = vmul.f32 %v1348_v23, %v575_v14 }
 0x111   : > { %v1350_v24 = vpop.eup %1349 }
 0x112   : > { %v590_v25 = vmul.f32 %v1350_v24, %v570_v17  ;;  %v1173_v24 = vld [vmem:[#allocation2] ss:$0 sm:$0xff] }
 0x114   : > { %1231 = vmatprep.mubr.msk.f32.mxu1 %vm496_vm0, %v590_v25 }
 0x115   : > { %1232 = vmatmul.mubr.msk.f32.vlgmr.msra.gmra.mxu1 %vm496_vm0, %v591_v26 }
 0x116   : > { %1246 = vmatpush3.msra.mxu1 %v807_v46 }
 0x117   : > { %1247 = vmatprep.subr.mxu1 %v806_v47 }
 0x118   : > { %1248 = vmatpush3.msra.mxu1 %v806_v47 }
 0x119   : > { %1249 = vmatprep.subr.mxu1 %v805_v48 }
 0x11a   : > { %1250 = vmatpush3.msra.mxu1 %v805_v48 }
 0x11b   : > { %1251 = vmatprep.subr.mxu1 %v804_v49 }
 0x11c   : > { %1252 = vmatpush3.msra.mxu1 %v804_v49 }
 0x1d5   : > { %v1233_v32 = vpop.f32.mrf.mxu1 }
 0x1d6   : > { %v681_v33 = vadd.f32 %v1233_v32, %v1158_v31 }
 0x1d7   : > { %v675_v34 = vpop.f32.mrf.mxu1 }
 0x1d8   : > { %v1162_v35 = vmul.f32 -1.442695, %v681_v33  ;;  %v676_v36 = vadd.f32 %v1158_v31, %v675_v34  ;;  %v1011_v31 = vpop.permute.xlu0 %1010 }
 0x1d9   : > { %vm1013_vm2 = vcmp.eq.s32.totalorder %v1011_v31, %v1005_v30 }
 0x1da   : > { %1351 = vpow2.f32 %v1162_v35  ;;  %v1161_v37 = vmul.f32 -1.442695, %v676_v36 }
 0x1dc   : > { %1353 = vpow2.f32 %v1161_v37 }
 0x1e7   : > { %v1352_v38 = vpop.eup %1351 }
 0x1e8   : > { %v691_v39 = vadd.f32 1.0, %v1352_v38 }
 0x1e9   : > { %v1354_v40 = vpop.eup %1353 }
 0x1ea   : > { %v690_v41 = vadd.f32 1.0, %v1354_v40  ;;  %1355 = vrcp.f32 %v691_v39 }
 0x1ec   : > { %1357 = vrcp.f32 %v690_v41 }
 0x1f7   : > { %v1356_v42 = vpop.eup %1355 }
 0x1f8   : > { %v697_v45 = vmul.f32 %v1356_v42, %v681_v33  ;;  %v1471_v33 = vmov 0.0  }
 0x1f9   : > { %v1358_v43 = vpop.eup %1357  ;;  %v1176_v34 = vsel %vm1012_vm1, 1.0, %v1471_v33  ;;  %v1177_v35 = vsel %vm1013_vm2, 1.0, %v1471_v33 }
 0x1fa   : > { %v696_v44 = vmul.f32 %v1358_v43, %v676_v36 }
 0x1fc   : > { %1242 = vmatprep.mubr.msk.f32.mxu0 %vm496_vm0, %v696_v44 }
 0x1fd   : > { %1243 = vmatmul.mubr.msk.f32.vlgmr.msra.gmra.mxu0 %vm496_vm0, %v697_v45  ;;  %v1037_v45 = vld [vmem:[%s1623_s25] sm:$0x1] }
 0x1fe   : > { %1257 = vmatpush3.msra.mxu0 %v913_v1 }
 0x1ff   : > { %1258 = vmatprep.subr.mxu0 %v912_v2 }
 0x200   : > { %1259 = vmatpush3.msra.mxu0 %v912_v2 }
 0x201   : > { %1260 = vmatprep.subr.mxu0 %v911_v3 }
 0x202   : > { %1261 = vmatpush3.msra.mxu0 %v911_v3 }
 0x203   : > { %1262 = vmatprep.subr.mxu0 %v910_v4 }
 0x204   : > { %1263 = vmatpush3.msra.mxu0 %v910_v4 }
 0x2bd   : > { %v1244_v51 = vpop.f32.mrf.mxu0 }
 0x2be   : > { %v787_v52 = vadd.f32 %v1244_v51, %v1163_v50 }
 0x2bf   : > { %v781_v53 = vpop.f32.mrf.mxu0 }
 0x2c0   : > { %v1167_v54 = vmul.f32 -1.442695, %v787_v52  ;;  %v782_v55 = vadd.f32 %v1163_v50, %v781_v53 }
 0x2c2   : > { %1359 = vpow2.f32 %v1167_v54  ;;  %v1166_v56 = vmul.f32 -1.442695, %v782_v55 }
 0x2c4   : > { %1361 = vpow2.f32 %v1166_v56 }
 0x2cf   : > { %v1360_v57 = vpop.eup %1359 }
 0x2d0   : > { %v797_v58 = vadd.f32 1.0, %v1360_v57 }
 0x2d1   : > { %v1362_v59 = vpop.eup %1361 }
 0x2d2   : > { %v796_v60 = vadd.f32 1.0, %v1362_v59  ;;  %1363 = vrcp.f32 %v797_v58 }
 0x2d4   : > { %1365 = vrcp.f32 %v796_v60 }
 0x2df   : > { %v1364_v61 = vpop.eup %1363 }
 0x2e0   : > { %v803_v0 = vmul.f32 %v1364_v61, %v787_v52 }
 0x2e1   : > { %v1366_v62 = vpop.eup %1365 }
 0x2e2   : > { %v802_v63 = vmul.f32 %v1366_v62, %v782_v55 }
 0x2e4   : > { %1253 = vmatprep.mubr.msk.f32.mxu1 %vm496_vm0, %v802_v63 }
 0x2e5   : > { %1254 = vmatmul.mubr.msk.f32.vlgmr.msra.gmra.mxu1 %vm496_vm0, %v803_v0 }
 0x3a5   : > { %v1255_v8 = vpop.f32.mrf.mxu1 }
 0x3a6   : > { %v893_v9 = vadd.f32 %v1255_v8, %v1168_v7 }
 0x3a7   : > { %v887_v10 = vpop.f32.mrf.mxu1 }
 0x3a8   : > { %v1172_v11 = vmul.f32 -1.442695, %v893_v9  ;;  %v888_v12 = vadd.f32 %v1168_v7, %v887_v10 }
 0x3aa   : > { %1367 = vpow2.f32 %v1172_v11  ;;  %v1171_v13 = vmul.f32 -1.442695, %v888_v12 }
 0x3ac   : > { %1369 = vpow2.f32 %v1171_v13 }
 0x3b7   : > { %v1368_v14 = vpop.eup %1367 }
 0x3b8   : > { %v903_v15 = vadd.f32 1.0, %v1368_v14 }
 0x3b9   : > { %v1370_v16 = vpop.eup %1369 }
 0x3ba   : > { %v902_v17 = vadd.f32 1.0, %v1370_v16  ;;  %1371 = vrcp.f32 %v903_v15 }
 0x3bc   : > { %1373 = vrcp.f32 %v902_v17 }
 0x3c7   : > { %v1372_v18 = vpop.eup %1371 }
 0x3c8   : > { %v909_v21 = vmul.f32 %v1372_v18, %v893_v9 }
 0x3c9   : > { %v1374_v19 = vpop.eup %1373 }
 0x3ca   : > { %v908_v20 = vmul.f32 %v1374_v19, %v888_v12 }
 0x3cc   : > { %1264 = vmatprep.mubr.msk.f32.mxu0 %vm496_vm0, %v908_v20 }
 0x3cd   : > { %1265 = vmatmul.mubr.msk.f32.vlgmr.msra.gmra.mxu0 %vm496_vm0, %v909_v21 }
 0x48d   : > { %v1266_v23 = vpop.f32.mrf.mxu0 }
 0x48e   : > { %v999_v27 = vadd.f32 %v1266_v23, %v1173_v24 }
 0x48f   : > { %v993_v25 = vpop.f32.mrf.mxu0 }
 0x490   : > { %v994_v26 = vadd.f32 %v1173_v24, %v993_v25 }
 0x492   : > { %1020 = vperm.xlu1 %1342, %v994_v26  }
 0x496   : > { %1025 = vperm.xlu1 %1342, %v999_v27  }
 0x50d   : > { %v1021_v32 = vpop.permute.xlu1 %1020 }
 0x50e   : > { %v1028_v37 = vmul.f32 %v1176_v34, %v1021_v32 }
 0x511   : > { %v1026_v36 = vpop.permute.xlu1 %1025 }
 0x512   : > { %v1029_v38 = vmul.f32 %v1177_v35, %v1026_v36 }
 0x514   : > { %v1030_v39 = vadd.f32 %v1029_v38, %v1028_v37 }
 0x516   : > { %v1031_v40 = vrot.slane %v1030_v39, 4 }
 0x518   : > { %v1032_v41 = vadd.f32 %v1031_v40, %v1030_v39 }
 0x51a   : > { %v1033_v42 = vrot.slane %v1032_v41, 2 }
 0x51c   : > { %v1034_v43 = vadd.f32 %v1033_v42, %v1032_v41 }
 0x51e   : > { %v1035_v44 = vrot.slane %v1034_v43, 1 }
 0x520   : > { %v1036_v46 = vadd.f32 %v1035_v44, %v1034_v43 }
 0x522   : > { %v1038_v47 = vadd.f32 %v1037_v45, %v1036_v46 }
 0x524   : > { %1039 = vst [vmem:[%s1623_s25] sm:$0x1] %v1038_v47 }
 0x525   : > { %1388 = shalt.err (!%p1385_p7)
}
 0x526   : > { %s1389_s15 = scalar_lea.hbm %s1052_s11, 128  ;;  %s1393_s17 = scalar_lea.hbm %s1772_s12, 256 }
 0x527   : > { %p1390_p8 = scmp.ne.s32.totalorder %s1052_s11, %s1389_s15  ;;  %p1394_p12 = scmp.lt.s32.totalorder %s1052_s11, %s1772_s12 }
 0x528   : > { %p1395_p13 = scmp.lt.s32.totalorder %s1393_s17, %s1389_s15 }
 0x529   : > { %p1391_p10 = pnand %p1390_p8, %p1590_p3 }
 0x52a   : > { %p1396_p0 = por %p1395_p13, %p1394_p12 }
 0x52b   : > { %p1392_p11 = pneg %p1391_p10 }
 0x52d   : > { %p1397_p1 = pnand %p1396_p0, %p1392_p11 }
 0x52f   : > { %1400 = shalt.err (!%p1397_p1)
}
 0x530   : > { %1267 = dma.vmem_to_hbm [thread:$0]  (%p1590_p3), %s1055_s28, 128, %s1052_s11, %s1041_s13  }
 0x531 PF: > { %p1273_p2 = scmp.ge.s32.totalorder %s1467_s30, 2  ;;  %s1066_s26 = sand.u32 1, %s1439_s23  }
 0x532   : > { %s1067_s19 = scalar_lea.sflag [#allocation4], %s1066_s26 }
 0x533   : > { %p1270_p4 = pnand %p1273_p2, %p1600_p9 }
 0x535   : > { %p1271_p5 = pneg %p1270_p4 }
 0x537   : > { %1434 = dma.done.wait (%p1271_p5), %s1067_s19, 128  }
 0x538   : > { %1436 = vsyncadd (%p1271_p5), %s1067_s19, 4294967168  ;;  %s27_s30 = sadd.s32 1, %s1467_s30   ;;  %s1788_s22 = sld [smem:[#allocation6_spill]] }
 0x539   : > { %p24_p6 = scmp.ge.s32.totalorder %s27_s30, 6   ;;  %s1789_s25 = sld [smem:[#allocation12_spill]] }
 0x53a   : > { %s1790_s26 = sld [smem:[#allocation7_spill]]  ;;  %s1794_s23 = smov %s1443_s24 }
 0x53b   : > { %s1791_s27 = sld [smem:[#allocation8_spill]]  ;;  %26 = sbr.rel (!%p24_p6) target bundleno = 8 (0x8), region = 110 }
 0x53c   : > { %s1792_s28 = sld [smem:[#allocation9_spill]] }
 0x53d   : > { %s1793_s29 = sld [smem:[#allocation10_spill]] }
 0x53e   : > { %s1795_s24 = smov %s1788_s22 }
 0x540   :  { %1072 = vsyncpa [#allocation4], 1 }
 0x541   :  { %1074 = vsyncpa [#allocation4 + $0x1], 1 }

</bundles_post_ra>
